<compile_context>
chip_gen: v7x
topology: tpu7x:2x2x1
jax: 0.10.0
libtpu: 0.0.40
codegen_flags: <defaults>
</compile_context>

<pallas_src>
import jax
import jax.numpy as jnp
from jax.experimental import pallas as pl
from jax.experimental.pallas import tpu as pltpu


def _round_up(a: int, b: int) -> int:
    return (a + b - 1) // b * b


def _device_vmem_bytes() -> int:
    """Physical VMEM per core; falls back to 128 MiB if the query fails."""
    try:
        return int(pltpu.get_tpu_info().vmem_capacity_bytes)
    except Exception:  # noqa: BLE001 - best-effort hardware query
        return 128 << 20


def _select_tiles(H: int, V: int, tm: int, tn: int, out_itm: int, vmem_cap: int):
    """Pick (tn_eff, tk_eff).  Prefer tk == H (W tile resident across token
    tiles); shrink tk only when the tile footprint would blow the VMEM budget
    (e.g. very large H on v7x's 64 MiB VMEM)."""
    in_itm = 2  # bf16 operands
    budget = int(vmem_cap * 0.70)
    tn_eff = min(tn, _round_up(V, 128))

    def footprint(tk):
        return (2 * (tm * tk + tk * tn_eff) * in_itm   # double-buffered x / W tiles
                + 2 * tm * tn_eff * out_itm            # double-buffered output tile
                + tm * tn_eff * 4                      # fp32 accumulator scratch
                + (2 << 20))                           # headroom

    tk_eff = H  # full hidden -> single K step -> W resident across token tiles
    if footprint(tk_eff) > budget:
        tk_eff = min(2048, _round_up(H, 128))
        while tk_eff > 256 and footprint(tk_eff) > budget:
            tk_eff //= 2
    return tn_eff, tk_eff


# ----------------------------------------------------------------------------
# Pallas kernel: canonical [M,K] x [K,N] matmul with fp32 accumulator scratch.
#   x_ref: (tm, tk) bf16, w_ref: (tk, tn) bf16 (W pre-transposed to [H, V]),
#   o_ref: (tm, tn) out_dtype, acc_ref: (tm, tn) fp32 VMEM scratch.
# Grid = (vocab, token, hidden); hidden is the reduction axis (last).
# ----------------------------------------------------------------------------
def _lm_head_kernel(x_ref, w_ref, o_ref, acc_ref):
    k = pl.program_id(2)

    @pl.when(k == 0)
    def _():
        acc_ref[...] = jnp.zeros_like(acc_ref)

    acc_ref[...] += jnp.dot(x_ref[...], w_ref[...],
                            preferred_element_type=jnp.float32)

    @pl.when(k == pl.num_programs(2) - 1)
    def _():
        o_ref[...] = acc_ref[...].astype(o_ref.dtype)


def _lm_head_pallas(x, w, tm, tn, tk, out_dtype, vmem_cap):
    """x: [t_pad, h_pad] bf16, w: [h_pad, v_pad] bf16 -> [t_pad, v_pad] out_dtype."""
    t_pad, h_pad = x.shape
    h_pad2, v_pad = w.shape
    assert h_pad == h_pad2
    n_v, n_t, n_k = v_pad // tn, t_pad // tm, h_pad // tk

    in_itm = x.dtype.itemsize
    out_itm = jnp.dtype(out_dtype).itemsize
    footprint = (2 * (tm * tk + tk * tn) * in_itm
                 + 2 * tm * tn * out_itm
                 + tm * tn * 4
                 + (2 << 20))
    vmem_limit = int(min(max(footprint, 32 << 20), int(vmem_cap * 0.75)))

    # W is read once when n_k == 1 (resident across token tiles); x is
    # re-streamed once per vocab tile.  Advisory only.
    w_reads = 1 if n_k == 1 else n_t
    cost = pl.CostEstimate(
        flops=2 * t_pad * v_pad * h_pad,
        transcendentals=0,
        bytes_accessed=(x.size * in_itm * n_v
                        + w.size * in_itm * w_reads
                        + t_pad * v_pad * out_itm),
    )

    return pl.pallas_call(
        _lm_head_kernel,
        out_shape=jax.ShapeDtypeStruct((t_pad, v_pad), out_dtype),
        grid_spec=pltpu.PrefetchScalarGridSpec(
            num_scalar_prefetch=0,
            grid=(n_v, n_t, n_k),
            in_specs=[
                pl.BlockSpec((tm, tk), lambda v, t, k: (t, k)),  # x tile (re-streamed)
                pl.BlockSpec((tk, tn), lambda v, t, k: (k, v)),  # W tile (resident if n_k==1)
            ],
            out_specs=pl.BlockSpec((tm, tn), lambda v, t, k: (t, v)),
            scratch_shapes=[pltpu.VMEM((tm, tn), jnp.float32)],
        ),
        compiler_params=pltpu.CompilerParams(
            # Vocab axis outermost + parallel: megacore on v7x splits W, not x.
            dimension_semantics=("parallel", "arbitrary", "arbitrary"),
            vmem_limit_bytes=vmem_limit,
        ),
        cost_estimate=cost,
    )(x, w)


# ----------------------------------------------------------------------------
# One-time weight preparation + jitted call path.
# ----------------------------------------------------------------------------
class PreparedLMHead:
    """Holds the lm_head weight in its kernel-ready form:
    bf16, transposed to [H, V], padded to tile multiples (done ONCE at load
    time, not per call).  __call__(x) runs the jitted pad + pallas + slice."""

    def __init__(self, weight, *, tm=256, tn=1024,
                 compute_dtype=jnp.bfloat16, out_dtype=jnp.float32):
        V, H = weight.shape
        self.V, self.H = V, H
        self.tm = tm
        self.compute_dtype = compute_dtype
        self.out_dtype = out_dtype
        self.vmem_cap = _device_vmem_bytes()

        out_itm = jnp.dtype(out_dtype).itemsize
        self.tn, self.tk = _select_tiles(H, V, tm, tn, out_itm, self.vmem_cap)
        self.v_pad = _round_up(V, self.tn)
        self.h_pad = H if self.tk == H else _round_up(H, self.tk)

        # One-time: cast -> transpose -> pad.  No per-call HBM traffic for W prep.
        w_t = jnp.transpose(weight).astype(compute_dtype)          # [H, V]
        if self.h_pad != H or self.v_pad != V:
            w_t = jnp.pad(w_t, ((0, self.h_pad - H), (0, self.v_pad - V)))
        self.w_prepared = jax.device_put(w_t)

        self._call = jax.jit(self._apply_impl)

    def _apply_impl(self, x, w_prep):
        T, H = x.shape
        assert H == self.H, f"hidden size mismatch: {H} vs {self.H}"
        tm_eff = min(self.tm, _round_up(T, 16))
        t_pad = _round_up(T, tm_eff)
        x = x.astype(self.compute_dtype)
        if t_pad != T or self.h_pad != H:
            x = jnp.pad(x, ((0, t_pad - T), (0, self.h_pad - H)))
        out = _lm_head_pallas(x, w_prep, tm_eff, self.tn, self.tk,
                              self.out_dtype, self.vmem_cap)
        return out[:T, :self.V]

    def __call__(self, x):
        return self._call(x, self.w_prepared)


def lm_head_matmul(x, w, **kwargs):
    """Convenience: x [T, H], w [V, H] -> logits [T, V].  In real use the
    PreparedLMHead is built once at weight-load time and reused per call."""
    return PreparedLMHead(w, **kwargs)(x)


# ----------------------------------------------------------------------------
# Minimal ParallelLMHead stand-in (what the patch wraps for name == 'lm_head')
# ----------------------------------------------------------------------------
class _QuantMethod:
    def __init__(self, prepared):
        self._prepared = prepared

    def apply(self, x):
        # Unpatched path: the actual lm_head compute (Pallas kernel).
        return self._prepared(x)


class ParallelLMHead:
    def __init__(self, vocab_size, hidden_size, key, dtype=jnp.float32):
        self.weight = (
            jax.random.normal(key, (vocab_size, hidden_size), dtype=dtype) * 0.02
        )
        # Weight prep (bf16 cast + transpose + pad) happens ONCE here.
        self._prepared = PreparedLMHead(self.weight)
        self.quant_method = _QuantMethod(self._prepared)


# ----------------------------------------------------------------------------
# Faithful port of PatchedUnmeasuredModule
# ----------------------------------------------------------------------------
class PatchedUnmeasuredModule:
    def __init__(self, name, mod=None, *args, **kwargs):
        if (
            name == "lm_head"
            and mod is not None
            and mod.__class__.__name__ == "ParallelLMHead"
        ):
            self.__dict__.update(mod.__dict__)
            self.quant_method.apply = self.forward
        self.name = name

    # forward has no numeric compute by design -- it only raises; the absorbed
    # lm_head matmul hot path is implemented in PreparedLMHead / _lm_head_kernel.
    def forward(self, *args, **kwargs):
        raise Exception(
            "Error - Layer '{}' was called but was not quantized because no "
            "measures were supplied.".format(self.name)
        )

    __call__ = forward

    def extra_repr(self) -> str:
        return (
            f"Dummy patch of {self.name} to raise exception as there are no "
            f"measurements provided."
        )


# ----------------------------------------------------------------------------
# Demo / self-test
# ----------------------------------------------------------------------------
def _reference(x, w, compute_dtype=jnp.bfloat16):
    xc = x.astype(compute_dtype).astype(jnp.float32)
    wc = w.astype(compute_dtype).astype(jnp.float32)
    return jnp.dot(xc, wc.T)


if __name__ == "__main__":
    key = jax.random.PRNGKey(0)
    k_w, k_x, k_w2, k_x2 = jax.random.split(key, 4)

    # 1) Aligned small case: batch=2, seq=8 -> T=16 tokens, hidden=32, vocab=256.
    batch, seq, hidden, vocab = 2, 8, 32, 256
    lm_head = ParallelLMHead(vocab, hidden, k_w)
    x = jax.random.normal(k_x, (batch * seq, hidden), dtype=jnp.float32)

    logits = jax.block_until_ready(lm_head.quant_method.apply(x))
    ref = _reference(x, lm_head.weight)
    assert logits.shape == (batch * seq, vocab)
    assert jnp.allclose(logits, ref, atol=2e-3, rtol=2e-2)

    # 2) Ragged case (non-multiples of the tiles): T=10 tokens, vocab=200.
    w2 = jax.random.normal(k_w2, (200, hidden), dtype=jnp.float32) * 0.02
    x2 = jax.random.normal(k_x2, (10, hidden), dtype=jnp.float32)
    logits2 = jax.block_until_ready(lm_head_matmul(x2, w2))
    ref2 = _reference(x2, w2)
    assert logits2.shape == (10, 200)
    assert jnp.allclose(logits2, ref2, atol=2e-3, rtol=2e-2)

    # 3) bf16 logits output (fp32 accumulation inside the kernel).
    logits_bf16 = jax.block_until_ready(
        lm_head_matmul(x, lm_head.weight, out_dtype=jnp.bfloat16)
    )
    assert logits_bf16.dtype == jnp.bfloat16
    assert jnp.allclose(logits_bf16.astype(jnp.float32), ref, atol=2e-2, rtol=5e-2)

    # 4) Apply the patch and verify the exact raising semantics of forward().
    patched = PatchedUnmeasuredModule("lm_head", lm_head)
    raised = False
    try:
        patched(x)
    except Exception as e:  # noqa: BLE001 - module raises bare Exception
        raised = (
            str(e)
            == "Error - Layer 'lm_head' was called but was not quantized "
            "because no measures were supplied."
        )
    assert raised, "patched forward did not raise the expected exception"

    # quant_method.apply was rebound to the raising forward, as in PyTorch.
    raised2 = False
    try:
        patched.quant_method.apply(x)
    except Exception:
        raised2 = True
    assert raised2

    print("KERNEL_OK")
</pallas_src>

<mosaic_0001>
module attributes {stable_mosaic.version = 11 : i64} {
  func.func @_lm_head_kernel(%arg0: i32, %arg1: i32, %arg2: i32, %arg3: memref<16x32xbf16, #tpu.memory_space<vmem>>, %arg4: memref<32x256xbf16, #tpu.memory_space<vmem>>, %arg5: memref<16x256xf32, #tpu.memory_space<vmem>>, %arg6: memref<16x256xf32, #tpu.memory_space<vmem>>) attributes {dimension_semantics = [#tpu.dimension_semantics<parallel>, #tpu.dimension_semantics<arbitrary>, #tpu.dimension_semantics<arbitrary>], iteration_bounds = array<i64: 1, 1, 1>, scalar_prefetch = 0 : i64, scratch_operands = 1 : i64, tpu.core_type = #tpu.core_type<tc>, window_params = [{transform_indices = @transform_0, window_bounds = array<i64: 16, 32>}, {transform_indices = @transform_1, window_bounds = array<i64: 32, 256>}, {transform_indices = @transform_2, window_bounds = array<i64: 16, 256>}]} {
    %c0_i32 = arith.constant 0 : i32
    %0 = arith.cmpi eq, %arg2, %c0_i32 : i32
    %1 = arith.extui %0 : i1 to i32
    %c0_i32_0 = arith.constant 0 : i32
    %2 = arith.cmpi ne, %1, %c0_i32_0 : i32
    scf.if %2 {
      %cst_10 = arith.constant 0.000000e+00 : f32
      %12 = vector.broadcast %cst_10 : f32 to vector<16x256xf32>
      %c0_11 = arith.constant 0 : index
      %c0_12 = arith.constant 0 : index
      %13 = vector.load %arg6[%c0_11, %c0_12] : memref<16x256xf32, #tpu.memory_space<vmem>>, vector<16x256xf32>
      tpu.vector_store %arg6[%c0_11, %c0_12], %12 {strides = array<i32>} : memref<16x256xf32, #tpu.memory_space<vmem>>, vector<16x256xf32>,
    } else {
    }
    %c0 = arith.constant 0 : index
    %c0_1 = arith.constant 0 : index
    %3 = vector.load %arg6[%c0, %c0_1] : memref<16x256xf32, #tpu.memory_space<vmem>>, vector<16x256xf32>
    %c0_2 = arith.constant 0 : index
    %c0_3 = arith.constant 0 : index
    %4 = vector.load %arg3[%c0_2, %c0_3] : memref<16x32xbf16, #tpu.memory_space<vmem>>, vector<16x32xbf16>
    %c0_4 = arith.constant 0 : index
    %c0_5 = arith.constant 0 : index
    %5 = vector.load %arg4[%c0_4, %c0_5] : memref<32x256xbf16, #tpu.memory_space<vmem>>, vector<32x256xbf16>
    %cst = arith.constant dense<0.000000e+00> : vector<16x256xf32>
    %6 = tpu.matmul %4, %5, %cst {dimension_numbers = #tpu.dot_dimension_numbers<[1], [0], [0], [1], [0, 0, 1, 1], [], []>} : vector<16x32xbf16>, vector<32x256xbf16>, vector<16x256xf32> -> vector<16x256xf32>
    %7 = arith.addf %3, %6 : vector<16x256xf32>
    %c0_6 = arith.constant 0 : index
    %c0_7 = arith.constant 0 : index
    %8 = vector.load %arg6[%c0_6, %c0_7] : memref<16x256xf32, #tpu.memory_space<vmem>>, vector<16x256xf32>
    tpu.vector_store %arg6[%c0_6, %c0_7], %7 {strides = array<i32>} : memref<16x256xf32, #tpu.memory_space<vmem>>, vector<16x256xf32>,
    %c0_i32_8 = arith.constant 0 : i32
    %9 = arith.cmpi eq, %arg2, %c0_i32_8 : i32
    %10 = arith.extui %9 : i1 to i32
    %c0_i32_9 = arith.constant 0 : i32
    %11 = arith.cmpi ne, %10, %c0_i32_9 : i32
    scf.if %11 {
      %c0_10 = arith.constant 0 : index
      %c0_11 = arith.constant 0 : index
      %12 = vector.load %arg6[%c0_10, %c0_11] : memref<16x256xf32, #tpu.memory_space<vmem>>, vector<16x256xf32>
      %c0_12 = arith.constant 0 : index
      %c0_13 = arith.constant 0 : index
      %13 = vector.load %arg5[%c0_12, %c0_13] : memref<16x256xf32, #tpu.memory_space<vmem>>, vector<16x256xf32>
      tpu.vector_store %arg5[%c0_12, %c0_13], %12 {strides = array<i32>} : memref<16x256xf32, #tpu.memory_space<vmem>>, vector<16x256xf32>,
    } else {
    }
    return
  }
  func.func @transform_0(%arg0: i32, %arg1: i32, %arg2: i32) -> (i32, i32) {
    %c0_i32 = arith.constant 0 : i32
    return %arg1, %arg2 : i32, i32
  }
  func.func @transform_1(%arg0: i32, %arg1: i32, %arg2: i32) -> (i32, i32) {
    %c0_i32 = arith.constant 0 : i32
    return %arg2, %arg0 : i32, i32
  }
  func.func @transform_2(%arg0: i32, %arg1: i32, %arg2: i32) -> (i32, i32) {
    %c0_i32 = arith.constant 0 : i32
    return %arg1, %arg0 : i32, i32
  }
}

</mosaic_0001>

<bundles_post_ra>
// kernel: _apply_impl.1
= control target key start
LH: loop header
LB: loop body
LE: loop exit
PB: predicated region body
PF: predicated region fallthrough
CT: control target
= control target key end

     0   :  { %7 = vsyncpa [#allocation4], 0  ;;  %s270_s0 = inlined_call_operand.vmem [shape: bf16[16,32], index: 0, kind: input, shape index: {}]   ;;  %s271_s1 = inlined_call_operand.hbm [shape: bf16[32,256], index: 1, kind: input, shape index: {}]   ;;  %s272_s2 = inlined_call_operand.hbm [shape: f32[16,256], index: 2, kind: output, shape index: {}]  }
   0x1   :  { %8 = vsyncpa [#allocation5], 0  ;;  %s221_s9 = smov [#allocation3]   ;;  %s173_s13 = scalar_lea.hbm %s271_s1, 512 }
   0x2   :  { %s16_s10 = sshll.u32 %s221_s9, 4  ;;  %p174_p0 = scmp.ne.s32.totalorder %s271_s1, %s173_s13  ;;  %s17_s10 = int_to_ptr.vmem [resolvable:$true] %s16_s10 }
   0x3   :  { %p177_p1 = scmp.lt.u32.totalorder %s173_s13, %s271_s1 }
   0x5   :  { %p179_p2 = pnand %p177_p1, %p174_p0 }
   0x7   :  { %182 = shalt.err (!%p179_p2)
}
   0x8   :  { %s183_s18 = scalar_lea.vmem %s17_s10, 512  ;;  %p188_p4 = scmp.lt.s32.totalorder %s17_s10, %s17_s10 }
   0x9   :  { %p184_p3 = scmp.ne.s32.totalorder %s17_s10, %s183_s18  ;;  %p189_p5 = scmp.lt.s32.totalorder %s183_s18, %s183_s18 }
   0xb   :  { %p190_p6 = por %p189_p5, %p188_p4 }
   0xd   :  { %p191_p7 = pnand %p190_p6, %p184_p3 }
   0xf   :  { %194 = shalt.err (!%p191_p7)
}
  0x10   :  { %s222_s19 = smov 128   ;;  %s223_s20 = smov 8  }
  0x11   :  { %22 = dma.hbm_to_vmem [thread:$0]  %s271_s1, 512, %s17_s10, [#allocation4], %s222_s19, %s222_s19, %s223_s20  }
  0x12   :  { %217 = dma.done.wait [#allocation4], 512  }
  0x13   :  { %218 = vsyncadd [#allocation4], 4294966784  ;;  %v224_v0 = vmov 0   ;;  %v166_v1 = vld [vmem:[#allocation3 + $0x4] ss:$8 sps:$4 sm:$0xff]   ;;  %vm70_vm0 = vcmask 261120  }
  0x14   :  { %106 = vmatprep.mubr.bf16.mxu0 %v224_v0  ;;  %v168_v2 = vld [vmem:[#allocation3] ss:$8 sps:$4 sm:$0xff]   ;;  %74 = vmatprep.subr.bf16.mxu0 %v166_v1  ;;  %v169_v3 = vld [vmem:[#allocation3 + $0x14] ss:$8 sps:$4 sm:$0xff]   ;;  %v171_v4 = vld [vmem:[#allocation3 + $0x10] ss:$8 sps:$4 sm:$0xff]  }
  0x15   :  { %75 = vmatpush1.bf16.msra.mxu0 %v168_v2  ;;  %v172_v5 = vld [vmem:[%s270_s0] sm:$0xff]   ;;  %s225_s25 = smov [#allocation6]  }
  0x16   :  { %76 = vmatprep.subr.bf16.mxu0 %v169_v3  ;;  %s141_s1 = sshll.u32 %s225_s25, 4  ;;  %s142_s1 = int_to_ptr.vmem [resolvable:$true] %s141_s1 }
  0x17   :  { %s195_s26 = scalar_lea.vmem %s142_s1, 512  ;;  %p200_p9 = scmp.lt.s32.totalorder %s142_s1, %s142_s1 }
  0x18   :  { %p196_p8 = scmp.ne.s32.totalorder %s142_s1, %s195_s26  ;;  %p201_p10 = scmp.lt.s32.totalorder %s195_s26, %s195_s26 }
  0x19   :  { %77 = vmatpush1.bf16.msra.mxu0 %v171_v4 }
  0x1a   :  { %p202_p11 = por %p201_p10, %p200_p9 }
  0x1c   :  { %158 = vmatmul.mubr.msk.bf16.vlgmr.msra.gmra.mrb[0].mxu0 %vm70_vm0, %v172_v5  ;;  %p203_p12 = pnand %p202_p11, %p196_p8 }
  0xef   :  { %v108_v6 = vpop.f32.mrb[0].mxu0 }
  0xf0   :  { %132 = vst [vmem:[#allocation6] sm:$0xff] %v108_v6  ;;  %v110_v7 = vpop.f32.mrb[1].mxu0 }
  0xf1   :  { %133 = vst [vmem:[#allocation6 + $0x8] sm:$0xff] %v110_v7  ;;  %v112_v8 = vpop.f32.mrb[2].mxu0 }
  0xf2   :  { %134 = vst [vmem:[#allocation6 + $0x10] sm:$0xff] %v112_v8  ;;  %v114_v9 = vpop.f32.mrb[3].mxu0 }
  0xf3   :  { %135 = vst [vmem:[#allocation6 + $0x18] sm:$0xff] %v114_v9 }
  0xf4   :  { %206 = shalt.err (!%p203_p12)
}
  0xf5   :  { %s207_s28 = scalar_lea.hbm %s272_s2, 512 }
  0xf6   :  { %p208_p13 = scmp.ne.s32.totalorder %s272_s2, %s207_s28  ;;  %p211_p0 = scmp.lt.u32.totalorder %s207_s28, %s272_s2 }
  0xf8   :  { %p213_p1 = pnand %p211_p0, %p208_p13 }
  0xfa   :  { %216 = shalt.err (!%p213_p1)
}
  0xfb   :  { %s226_s5 = smov 256   ;;  %s227_s6 = smov 16  }
  0xfc   :  { %147 = dma.vmem_to_hbm [thread:$0]  %s142_s1, 512, %s272_s2, [#allocation5], %s226_s5, %s226_s5, %s227_s6  }
  0xfd   :  { %219 = dma.done.wait [#allocation5], 512  }
  0xfe   :  { %220 = vsyncadd [#allocation5], 4294966784 }
  0xff   :  { %151 = vsyncpa [#allocation4], 1 }
 0x100   :  { %152 = vsyncpa [#allocation5], 1 }

</bundles_post_ra>
